<compile_context>
chip_gen: v5e
topology: v5e:2x2
jax: 0.10.0
libtpu: 0.0.40
codegen_flags: <defaults>
</compile_context>

<pallas_src>
import functools
import math

import jax
import jax.numpy as jnp
from jax import lax
from jax.experimental import pallas as pl
from jax.experimental.pallas import tpu as pltpu


# ---------------------------------------------------------------------------
# Hardware queries (best effort, safe fallbacks).
# ---------------------------------------------------------------------------

def _vmem_capacity_bytes():
    try:
        return int(pltpu.get_tpu_info().vmem_capacity_bytes)
    except Exception:
        return 64 << 20  # v7x-safe conservative default


def _preferred_tile():
    # v5e's 128x128 MXU gains nothing from 256-wide tiles; v6e/v7x (256x256) do.
    try:
        kind = jax.devices()[0].device_kind.lower()
        if "v5 lite" in kind or "v5e" in kind or "v5lite" in kind:
            return 128
    except Exception:
        pass
    return 256


def _pick_tile(t, preferred):
    """Largest 'nice' tile that divides t (or t itself if it is small)."""
    if t <= preferred:
        return t
    for cand in (preferred, 128, 64, 32, 16, 8):
        if cand <= t and t % cand == 0:
            return cand
    return t


# ---------------------------------------------------------------------------
# Kernel 1: QKV projection (once per token tile).
# ---------------------------------------------------------------------------

def _qkv_proj_kernel(x_ref, wq_ref, wk_ref, wv_ref, q_ref, k_ref, v_ref, *,
                     num_heads, kqv_dim, scale):
    x = x_ref[0]                                              # (tt, E) native dtype
    e = kqv_dim
    # Full-width (tt, H*Ek) matmuls -> good MXU output-width utilization.
    q = jnp.dot(x, wq_ref[...], preferred_element_type=jnp.float32) * scale
    k = jnp.dot(x, wk_ref[...], preferred_element_type=jnp.float32)
    v = jnp.dot(x, wv_ref[...], preferred_element_type=jnp.float32)
    q = q.astype(q_ref.dtype)
    k = k.astype(k_ref.dtype)
    v = v.astype(v_ref.dtype)
    # Split heads into the (H, tt, Ek) output layout so every block the
    # attention kernel touches is lane-dense.  Done once per token, off the
    # attention hot loop.
    for hh in range(num_heads):
        sl = slice(hh * e, (hh + 1) * e)
        q_ref[0, hh] = q[:, sl]
        k_ref[0, hh] = k[:, sl]
        v_ref[0, hh] = v[:, sl]


def _qkv_project(x, wq_t, wk_t, wv_t, *, num_heads, kqv_dim, tt, vmem_limit,
                 single_buffer_weights):
    b, t, emb = x.shape
    he = num_heads * kqv_dim
    n_t = t // tt

    def w_spec():
        imap = lambda bi, ti: (0, 0)
        if single_buffer_weights:
            # Constant-index weights never get re-DMA'd; one buffer is enough
            # (halves weight VMEM residency vs. default double buffering).
            return pl.BlockSpec((emb, he), imap, pipeline_mode=pl.Buffered(1))
        return pl.BlockSpec((emb, he), imap)

    head_shape = jax.ShapeDtypeStruct((b, num_heads, t, kqv_dim), x.dtype)
    out_spec = pl.BlockSpec((1, num_heads, tt, kqv_dim),
                            lambda bi, ti: (bi, 0, ti, 0))
    kernel = functools.partial(_qkv_proj_kernel, num_heads=num_heads,
                               kqv_dim=kqv_dim,
                               scale=1.0 / math.sqrt(kqv_dim))
    return pl.pallas_call(
        kernel,
        out_shape=(head_shape, head_shape, head_shape),
        grid_spec=pltpu.PrefetchScalarGridSpec(
            num_scalar_prefetch=0,
            grid=(b, n_t),
            in_specs=[
                pl.BlockSpec((1, tt, emb), lambda bi, ti: (bi, ti, 0)),   # x tile
                w_spec(), w_spec(), w_spec(),                             # Wq/Wk/Wv
            ],
            out_specs=[out_spec, out_spec, out_spec],
        ),
        compiler_params=pltpu.CompilerParams(
            dimension_semantics=("parallel", "parallel"),
            vmem_limit_bytes=vmem_limit),
    )(x, wq_t, wk_t, wv_t)


# ---------------------------------------------------------------------------
# Kernel 2: flash attention + output projection.
# ---------------------------------------------------------------------------

def _flash_mhsa_kernel(q_ref, k_ref, v_ref, wo_ref, bo_ref, o_ref,
                       m_scr, l_scr, acc_scr, out_scr):
    hi = pl.program_id(2)
    ki = pl.program_id(3)
    nh = pl.num_programs(2)
    nk = pl.num_programs(3)

    q = q_ref[0, 0]                                           # (tq, Ek)
    k = k_ref[0, 0]                                           # (tk, Ek)
    v = v_ref[0, 0]                                           # (tk, Ek)

    # Scores: contract the last (Ek) dims -> no transpose of K.
    s = lax.dot_general(q, k, (((1,), (1,)), ((), ())),
                        preferred_element_type=jnp.float32)   # (tq, tk) f32
    m_cur = jnp.max(s, axis=-1, keepdims=True)                # (tq, 1)

    # TODO(synk): on v6e/v7x the exp below could run in bf16 (faster EUP path)
    # and the row-sum could be folded into the P@V matmul via a ones column;
    # kept f32 + XLU sum so the same kernel stays accurate/valid on v5e.
    @pl.when(ki == 0)
    def _first_kv_tile():
        # Plain write: skip the zero-fill + exp(-inf) rescale on the 1st step.
        p = jnp.exp(s - m_cur)
        m_scr[...] = m_cur
        l_scr[...] = jnp.sum(p, axis=-1, keepdims=True)
        acc_scr[...] = jnp.dot(p.astype(v.dtype), v,
                               preferred_element_type=jnp.float32)

    @pl.when(ki > 0)
    def _running_kv_tile():
        m_prev = m_scr[...]
        m_new = jnp.maximum(m_prev, m_cur)
        alpha = jnp.exp(m_prev - m_new)
        p = jnp.exp(s - m_new)
        m_scr[...] = m_new
        l_scr[...] = alpha * l_scr[...] + jnp.sum(p, axis=-1, keepdims=True)
        acc_scr[...] = alpha * acc_scr[...] + jnp.dot(
            p.astype(v.dtype), v, preferred_element_type=jnp.float32)

    @pl.when(ki == nk - 1)
    def _head_done():
        # Exact normalization: off the hot kv loop, approx reciprocal buys ~0.
        head_out = (acc_scr[...] / l_scr[...]).astype(wo_ref.dtype)     # (tq, Ek)
        contrib = jnp.dot(head_out, wo_ref[0],
                          preferred_element_type=jnp.float32)           # (tq, E)

        @pl.when(hi == 0)
        def _():
            out_scr[...] = contrib

        @pl.when(hi > 0)
        def _():
            out_scr[...] = out_scr[...] + contrib

        @pl.when(hi == nh - 1)
        def _():
            o_ref[0] = (out_scr[...] + bo_ref[...].astype(jnp.float32)
                        ).astype(o_ref.dtype)


def _flash_attention(q_h, k_h, v_h, wo_heads, bo2, *, emb, tq, tk, out_dtype,
                     vmem_limit):
    b, num_heads, t, e = q_h.shape
    n_q, n_k = t // tq, t // tk
    return pl.pallas_call(
        _flash_mhsa_kernel,
        out_shape=jax.ShapeDtypeStruct((b, t, emb), out_dtype),
        grid_spec=pltpu.PrefetchScalarGridSpec(
            num_scalar_prefetch=0,
            grid=(b, n_q, num_heads, n_k),
            in_specs=[
                pl.BlockSpec((1, 1, tq, e), lambda bi, qi, hi, ki: (bi, hi, qi, 0)),
                pl.BlockSpec((1, 1, tk, e), lambda bi, qi, hi, ki: (bi, hi, ki, 0)),
                pl.BlockSpec((1, 1, tk, e), lambda bi, qi, hi, ki: (bi, hi, ki, 0)),
                pl.BlockSpec((1, e, emb), lambda bi, qi, hi, ki: (hi, 0, 0)),   # Wo slice
                pl.BlockSpec((1, emb), lambda bi, qi, hi, ki: (0, 0)),          # bias
            ],
            out_specs=pl.BlockSpec((1, tq, emb),
                                   lambda bi, qi, hi, ki: (bi, qi, 0)),
            scratch_shapes=[
                pltpu.VMEM((tq, 1), jnp.float32),     # running max m
                pltpu.VMEM((tq, 1), jnp.float32),     # running denom l
                pltpu.VMEM((tq, e), jnp.float32),     # per-head P@V accumulator
                pltpu.VMEM((tq, emb), jnp.float32),   # head-merged output acc
            ],
        ),
        compiler_params=pltpu.CompilerParams(
            # b * n_q is the parallel extent: keep it >= 2 (ideally even) so
            # both v7x TensorCores have work.
            dimension_semantics=("parallel", "parallel", "arbitrary", "arbitrary"),
            vmem_limit_bytes=vmem_limit),
    )(q_h, k_h, v_h, wo_heads, bo2)


# ---------------------------------------------------------------------------
# Public wrapper.
# ---------------------------------------------------------------------------

def mhsa_forward(x, wq_t, wk_t, wv_t, wo_t, bo, *, num_heads, kqv_dim,
                 tq=None, tk=None, tt=None):
    """x: (B, T, E); wq_t/wk_t/wv_t: (E, H*Ek) pre-transposed; wo_t: (H*Ek, E);
    bo: (E,). Matches the PyTorch module's nn.Linear semantics."""
    b, t, emb = x.shape
    he = num_heads * kqv_dim
    assert wq_t.shape == (emb, he) and wk_t.shape == (emb, he)
    assert wv_t.shape == (emb, he) and wo_t.shape == (he, emb)

    pref = _preferred_tile()
    if tq is None:
        tq = _pick_tile(t, pref)
    if tk is None:
        tk = _pick_tile(t, pref)
    if tt is None:
        tt = _pick_tile(t, pref)
    assert t % tq == 0 and t % tk == 0 and t % tt == 0

    cap = _vmem_capacity_bytes()
    vmem_cap = int(0.85 * cap)          # headroom for Mosaic internal scratch
    xbytes = jnp.dtype(x.dtype).itemsize
    wbytes = jnp.dtype(wq_t.dtype).itemsize

    proj_est = (3 * emb * he * wbytes               # single-buffered weights
                + 2 * tt * emb * xbytes             # x tile (double buffered)
                + 2 * 3 * tt * he * xbytes          # q/k/v out tiles (double buffered)
                + 3 * tt * he * 4                   # f32 matmul results
                + (4 << 20))
    attn_est = (2 * (tq + 2 * tk) * kqv_dim * xbytes
                + 2 * kqv_dim * emb * wbytes + 2 * emb * wbytes
                + 2 * tq * emb * xbytes
                + tq * (kqv_dim + emb) * 4 + 2 * tq * 128 * 4
                + (4 << 20))
    proj_vmem = int(min(max(proj_est, 32 << 20), vmem_cap))
    attn_vmem = int(min(max(attn_est, 32 << 20), vmem_cap))

    wo_heads = wo_t.reshape(num_heads, kqv_dim, emb)    # per-head Wo slices
    bo2 = bo.reshape(1, emb)

    # ---- QKV projection: once per token (no n_q-fold redundancy).
    try:
        q_h, k_h, v_h = _qkv_project(
            x, wq_t, wk_t, wv_t, num_heads=num_heads, kqv_dim=kqv_dim, tt=tt,
            vmem_limit=proj_vmem, single_buffer_weights=True)
    except Exception:
        # pipeline_mode=pl.Buffered(1) unsupported on this jax version: fall
        # back to default double-buffered weights (correctness unaffected).
        q_h, k_h, v_h = _qkv_project(
            x, wq_t, wk_t, wv_t, num_heads=num_heads, kqv_dim=kqv_dim, tt=tt,
            vmem_limit=proj_vmem, single_buffer_weights=False)

    # ---- Flash attention + fused output projection.
    return _flash_attention(q_h, k_h, v_h, wo_heads, bo2, emb=emb, tq=tq,
                            tk=tk, out_dtype=x.dtype, vmem_limit=attn_vmem)


# ---------------------------------------------------------------------------
# Pure-JAX reference and self-test.
# ---------------------------------------------------------------------------

def mhsa_reference(x, wq_t, wk_t, wv_t, wo_t, bo, *, num_heads, kqv_dim):
    b, t, emb = x.shape
    h, e = num_heads, kqv_dim
    q = (x @ wq_t).reshape(b, t, h, e).transpose(0, 2, 1, 3)
    k = (x @ wk_t).reshape(b, t, h, e).transpose(0, 2, 1, 3)
    v = (x @ wv_t).reshape(b, t, h, e).transpose(0, 2, 1, 3)
    dot = jnp.einsum('bhqe,bhke->bhqk', q, k) / jnp.sqrt(jnp.float32(e))
    attn = jax.nn.softmax(dot, axis=-1)
    out = jnp.einsum('bhqk,bhke->bhqe', attn, v)
    out = out.transpose(0, 2, 1, 3).reshape(b, t, h * e)
    return out @ wo_t + bo


def _make_params(key, emb_dim, he):
    kq, kk, kv, ko, kb = jax.random.split(key, 5)
    # PyTorch Linear stores (out, in); build the transposed (in, out) form.
    s_in = 1.0 / math.sqrt(emb_dim)
    s_he = 1.0 / math.sqrt(he)
    wq_t = jax.random.uniform(kq, (emb_dim, he), jnp.float32, -s_in, s_in)
    wk_t = jax.random.uniform(kk, (emb_dim, he), jnp.float32, -s_in, s_in)
    wv_t = jax.random.uniform(kv, (emb_dim, he), jnp.float32, -s_in, s_in)
    wo_t = jax.random.uniform(ko, (he, emb_dim), jnp.float32, -s_he, s_he)
    bo = jax.random.uniform(kb, (emb_dim,), jnp.float32, -s_he, s_he)
    return wq_t, wk_t, wv_t, wo_t, bo


if __name__ == "__main__":
    key = jax.random.PRNGKey(0)
    k1, k2, kp1, kp2 = jax.random.split(key, 4)

    # Normalization is exact now; the tolerance only covers default-precision
    # f32 MXU matmuls (bf16 passes) in both the kernel and the XLA reference.
    TOL = dict(atol=1e-2, rtol=1e-2)

    # Case 1: shapes consistent with the module spec (single q/kv tile).
    B, T, EMB, KQV, H = 2, 8, 32, 16, 2
    x = jax.random.normal(k1, (B, T, EMB), dtype=jnp.float32)
    params = _make_params(kp1, EMB, KQV * H)
    out = jax.block_until_ready(
        mhsa_forward(x, *params, num_heads=H, kqv_dim=KQV))
    ref = mhsa_reference(x, *params, num_heads=H, kqv_dim=KQV)
    assert out.shape == (B, T, EMB)
    assert jnp.allclose(out, ref, **TOL), float(jnp.max(jnp.abs(out - ref)))

    # Case 2: longer sequence with explicit tiling -> exercises the online
    # softmax across multiple q/kv tiles and the multi-head output merge.
    B2, T2 = 2, 32
    x2 = jax.random.normal(k2, (B2, T2, EMB), dtype=jnp.float32)
    params2 = _make_params(kp2, EMB, KQV * H)
    out2 = jax.block_until_ready(
        mhsa_forward(x2, *params2, num_heads=H, kqv_dim=KQV,
                     tq=16, tk=16, tt=16))
    ref2 = mhsa_reference(x2, *params2, num_heads=H, kqv_dim=KQV)
    assert out2.shape == (B2, T2, EMB)
    assert jnp.allclose(out2, ref2, **TOL), float(jnp.max(jnp.abs(out2 - ref2)))

    print("KERNEL_OK")
</pallas_src>

<mosaic_0001>
module attributes {stable_mosaic.version = 11 : i64} {
  func.func @_qkv_proj_kernel(%arg0: i32, %arg1: i32, %arg2: memref<1x8x32xf32, #tpu.memory_space<vmem>>, %arg3: memref<32x32xf32, #tpu.memory_space<vmem>>, %arg4: memref<32x32xf32, #tpu.memory_space<vmem>>, %arg5: memref<32x32xf32, #tpu.memory_space<vmem>>, %arg6: memref<1x2x8x16xf32, #tpu.memory_space<vmem>>, %arg7: memref<1x2x8x16xf32, #tpu.memory_space<vmem>>, %arg8: memref<1x2x8x16xf32, #tpu.memory_space<vmem>>) attributes {dimension_semantics = [#tpu.dimension_semantics<parallel>, #tpu.dimension_semantics<parallel>], iteration_bounds = array<i64: 2, 1>, scalar_prefetch = 0 : i64, scratch_operands = 0 : i64, tpu.core_type = #tpu.core_type<tc>, window_params = [{transform_indices = @transform_0, window_bounds = array<i64: 1, 8, 32>}, {pipeline_mode = #tpu.pipeline_mode<synchronous>, transform_indices = @transform_1, window_bounds = array<i64: 32, 32>}, {pipeline_mode = #tpu.pipeline_mode<synchronous>, transform_indices = @transform_2, window_bounds = array<i64: 32, 32>}, {pipeline_mode = #tpu.pipeline_mode<synchronous>, transform_indices = @transform_3, window_bounds = array<i64: 32, 32>}, {transform_indices = @transform_4, window_bounds = array<i64: 1, 2, 8, 16>}, {transform_indices = @transform_5, window_bounds = array<i64: 1, 2, 8, 16>}, {transform_indices = @transform_6, window_bounds = array<i64: 1, 2, 8, 16>}]} {
    %c0 = arith.constant 0 : index
    %c0_0 = arith.constant 0 : index
    %c0_1 = arith.constant 0 : index
    %0 = vector.load %arg2[%c0, %c0_0, %c0_1] : memref<1x8x32xf32, #tpu.memory_space<vmem>>, vector<1x8x32xf32>
    %1 = vector.shape_cast %0 : vector<1x8x32xf32> to vector<8x32xf32>
    %c0_2 = arith.constant 0 : index
    %c0_3 = arith.constant 0 : index
    %2 = vector.load %arg3[%c0_2, %c0_3] : memref<32x32xf32, #tpu.memory_space<vmem>>, vector<32x32xf32>
    %cst = arith.constant dense<0.000000e+00> : vector<8x32xf32>
    %3 = tpu.matmul %1, %2, %cst {dimension_numbers = #tpu.dot_dimension_numbers<[1], [0], [0], [1], [0, 0, 1, 1], [], []>} : vector<8x32xf32>, vector<32x32xf32>, vector<8x32xf32> -> vector<8x32xf32>
    %cst_4 = arith.constant 2.500000e-01 : f32
    %4 = vector.broadcast %cst_4 : f32 to vector<8x32xf32>
    %5 = arith.mulf %3, %4 : vector<8x32xf32>
    %c0_5 = arith.constant 0 : index
    %c0_6 = arith.constant 0 : index
    %6 = vector.load %arg4[%c0_5, %c0_6] : memref<32x32xf32, #tpu.memory_space<vmem>>, vector<32x32xf32>
    %cst_7 = arith.constant dense<0.000000e+00> : vector<8x32xf32>
    %7 = tpu.matmul %1, %6, %cst_7 {dimension_numbers = #tpu.dot_dimension_numbers<[1], [0], [0], [1], [0, 0, 1, 1], [], []>} : vector<8x32xf32>, vector<32x32xf32>, vector<8x32xf32> -> vector<8x32xf32>
    %c0_8 = arith.constant 0 : index
    %c0_9 = arith.constant 0 : index
    %8 = vector.load %arg5[%c0_8, %c0_9] : memref<32x32xf32, #tpu.memory_space<vmem>>, vector<32x32xf32>
    %cst_10 = arith.constant dense<0.000000e+00> : vector<8x32xf32>
    %9 = tpu.matmul %1, %8, %cst_10 {dimension_numbers = #tpu.dot_dimension_numbers<[1], [0], [0], [1], [0, 0, 1, 1], [], []>} : vector<8x32xf32>, vector<32x32xf32>, vector<8x32xf32> -> vector<8x32xf32>
    %10 = vector.extract_strided_slice %5 {offsets = [0, 0], sizes = [8, 16], strides = [1, 1]} : vector<8x32xf32> to vector<8x16xf32>
    %c0_11 = arith.constant 0 : index
    %c0_12 = arith.constant 0 : index
    %c0_13 = arith.constant 0 : index
    %c0_14 = arith.constant 0 : index
    %11 = vector.load %arg6[%c0_11, %c0_12, %c0_13, %c0_14] : memref<1x2x8x16xf32, #tpu.memory_space<vmem>>, vector<1x1x8x16xf32>
    %12 = vector.shape_cast %11 : vector<1x1x8x16xf32> to vector<8x16xf32>
    %13 = vector.shape_cast %10 : vector<8x16xf32> to vector<1x1x8x16xf32>
    tpu.vector_store %arg6[%c0_11, %c0_12, %c0_13, %c0_14], %13 {strides = array<i32>} : memref<1x2x8x16xf32, #tpu.memory_space<vmem>>, vector<1x1x8x16xf32>,
    %14 = vector.extract_strided_slice %7 {offsets = [0, 0], sizes = [8, 16], strides = [1, 1]} : vector<8x32xf32> to vector<8x16xf32>
    %c0_15 = arith.constant 0 : index
    %c0_16 = arith.constant 0 : index
    %c0_17 = arith.constant 0 : index
    %c0_18 = arith.constant 0 : index
    %15 = vector.load %arg7[%c0_15, %c0_16, %c0_17, %c0_18] : memref<1x2x8x16xf32, #tpu.memory_space<vmem>>, vector<1x1x8x16xf32>
    %16 = vector.shape_cast %15 : vector<1x1x8x16xf32> to vector<8x16xf32>
    %17 = vector.shape_cast %14 : vector<8x16xf32> to vector<1x1x8x16xf32>
    tpu.vector_store %arg7[%c0_15, %c0_16, %c0_17, %c0_18], %17 {strides = array<i32>} : memref<1x2x8x16xf32, #tpu.memory_space<vmem>>, vector<1x1x8x16xf32>,
    %18 = vector.extract_strided_slice %9 {offsets = [0, 0], sizes = [8, 16], strides = [1, 1]} : vector<8x32xf32> to vector<8x16xf32>
    %c0_19 = arith.constant 0 : index
    %c0_20 = arith.constant 0 : index
    %c0_21 = arith.constant 0 : index
    %c0_22 = arith.constant 0 : index
    %19 = vector.load %arg8[%c0_19, %c0_20, %c0_21, %c0_22] : memref<1x2x8x16xf32, #tpu.memory_space<vmem>>, vector<1x1x8x16xf32>
    %20 = vector.shape_cast %19 : vector<1x1x8x16xf32> to vector<8x16xf32>
    %21 = vector.shape_cast %18 : vector<8x16xf32> to vector<1x1x8x16xf32>
    tpu.vector_store %arg8[%c0_19, %c0_20, %c0_21, %c0_22], %21 {strides = array<i32>} : memref<1x2x8x16xf32, #tpu.memory_space<vmem>>, vector<1x1x8x16xf32>,
    %22 = vector.extract_strided_slice %5 {offsets = [0, 16], sizes = [8, 16], strides = [1, 1]} : vector<8x32xf32> to vector<8x16xf32>
    %c0_23 = arith.constant 0 : index
    %c1 = arith.constant 1 : index
    %c0_24 = arith.constant 0 : index
    %c0_25 = arith.constant 0 : index
    %23 = vector.load %arg6[%c0_23, %c1, %c0_24, %c0_25] : memref<1x2x8x16xf32, #tpu.memory_space<vmem>>, vector<1x1x8x16xf32>
    %24 = vector.shape_cast %23 : vector<1x1x8x16xf32> to vector<8x16xf32>
    %25 = vector.shape_cast %22 : vector<8x16xf32> to vector<1x1x8x16xf32>
    tpu.vector_store %arg6[%c0_23, %c1, %c0_24, %c0_25], %25 {strides = array<i32>} : memref<1x2x8x16xf32, #tpu.memory_space<vmem>>, vector<1x1x8x16xf32>,
    %26 = vector.extract_strided_slice %7 {offsets = [0, 16], sizes = [8, 16], strides = [1, 1]} : vector<8x32xf32> to vector<8x16xf32>
    %c0_26 = arith.constant 0 : index
    %c1_27 = arith.constant 1 : index
    %c0_28 = arith.constant 0 : index
    %c0_29 = arith.constant 0 : index
    %27 = vector.load %arg7[%c0_26, %c1_27, %c0_28, %c0_29] : memref<1x2x8x16xf32, #tpu.memory_space<vmem>>, vector<1x1x8x16xf32>
    %28 = vector.shape_cast %27 : vector<1x1x8x16xf32> to vector<8x16xf32>
    %29 = vector.shape_cast %26 : vector<8x16xf32> to vector<1x1x8x16xf32>
    tpu.vector_store %arg7[%c0_26, %c1_27, %c0_28, %c0_29], %29 {strides = array<i32>} : memref<1x2x8x16xf32, #tpu.memory_space<vmem>>, vector<1x1x8x16xf32>,
    %30 = vector.extract_strided_slice %9 {offsets = [0, 16], sizes = [8, 16], strides = [1, 1]} : vector<8x32xf32> to vector<8x16xf32>
    %c0_30 = arith.constant 0 : index
    %c1_31 = arith.constant 1 : index
    %c0_32 = arith.constant 0 : index
    %c0_33 = arith.constant 0 : index
    %31 = vector.load %arg8[%c0_30, %c1_31, %c0_32, %c0_33] : memref<1x2x8x16xf32, #tpu.memory_space<vmem>>, vector<1x1x8x16xf32>
    %32 = vector.shape_cast %31 : vector<1x1x8x16xf32> to vector<8x16xf32>
    %33 = vector.shape_cast %30 : vector<8x16xf32> to vector<1x1x8x16xf32>
    tpu.vector_store %arg8[%c0_30, %c1_31, %c0_32, %c0_33], %33 {strides = array<i32>} : memref<1x2x8x16xf32, #tpu.memory_space<vmem>>, vector<1x1x8x16xf32>,
    return
  }
  func.func @transform_0(%arg0: i32, %arg1: i32) -> (i32, i32, i32) {
    %c0_i32 = arith.constant 0 : i32
    %c0_i32_0 = arith.constant 0 : i32
    return %arg0, %arg1, %c0_i32 : i32, i32, i32
  }
  func.func @transform_1(%arg0: i32, %arg1: i32) -> (i32, i32) {
    %c0_i32 = arith.constant 0 : i32
    %c0_i32_0 = arith.constant 0 : i32
    %c0_i32_1 = arith.constant 0 : i32
    return %c0_i32, %c0_i32_0 : i32, i32
  }
  func.func @transform_2(%arg0: i32, %arg1: i32) -> (i32, i32) {
    %c0_i32 = arith.constant 0 : i32
    %c0_i32_0 = arith.constant 0 : i32
    %c0_i32_1 = arith.constant 0 : i32
    return %c0_i32, %c0_i32_0 : i32, i32
  }
  func.func @transform_3(%arg0: i32, %arg1: i32) -> (i32, i32) {
    %c0_i32 = arith.constant 0 : i32
    %c0_i32_0 = arith.constant 0 : i32
    %c0_i32_1 = arith.constant 0 : i32
    return %c0_i32, %c0_i32_0 : i32, i32
  }
  func.func @transform_4(%arg0: i32, %arg1: i32) -> (i32, i32, i32, i32) {
    %c0_i32 = arith.constant 0 : i32
    %c0_i32_0 = arith.constant 0 : i32
    %c0_i32_1 = arith.constant 0 : i32
    return %arg0, %c0_i32, %arg1, %c0_i32_0 : i32, i32, i32, i32
  }
  func.func @transform_5(%arg0: i32, %arg1: i32) -> (i32, i32, i32, i32) {
    %c0_i32 = arith.constant 0 : i32
    %c0_i32_0 = arith.constant 0 : i32
    %c0_i32_1 = arith.constant 0 : i32
    return %arg0, %c0_i32, %arg1, %c0_i32_0 : i32, i32, i32, i32
  }
  func.func @transform_6(%arg0: i32, %arg1: i32) -> (i32, i32, i32, i32) {
    %c0_i32 = arith.constant 0 : i32
    %c0_i32_0 = arith.constant 0 : i32
    %c0_i32_1 = arith.constant 0 : i32
    return %arg0, %c0_i32, %arg1, %c0_i32_0 : i32, i32, i32, i32
  }
}

module attributes {stable_mosaic.version = 11 : i64} {
  func.func @_qkv_proj_kernel(%arg0: i32, %arg1: i32, %arg2: memref<1x8x32xf32, #tpu.memory_space<vmem>>, %arg3: memref<32x32xf32, #tpu.memory_space<vmem>>, %arg4: memref<32x32xf32, #tpu.memory_space<vmem>>, %arg5: memref<32x32xf32, #tpu.memory_space<vmem>>, %arg6: memref<1x2x8x16xf32, #tpu.memory_space<vmem>>, %arg7: memref<1x2x8x16xf32, #tpu.memory_space<vmem>>, %arg8: memref<1x2x8x16xf32, #tpu.memory_space<vmem>>) attributes {dimension_semantics = [#tpu.dimension_semantics<parallel>, #tpu.dimension_semantics<parallel>], iteration_bounds = array<i64: 2, 1>, scalar_prefetch = 0 : i64, scratch_operands = 0 : i64, tpu.core_type = #tpu.core_type<tc>, window_params = [{transform_indices = @transform_0, window_bounds = array<i64: 1, 8, 32>}, {pipeline_mode = #tpu.pipeline_mode<synchronous>, transform_indices = @transform_1, window_bounds = array<i64: 32, 32>}, {pipeline_mode = #tpu.pipeline_mode<synchronous>, transform_indices = @transform_2, window_bounds = array<i64: 32, 32>}, {pipeline_mode = #tpu.pipeline_mode<synchronous>, transform_indices = @transform_3, window_bounds = array<i64: 32, 32>}, {transform_indices = @transform_4, window_bounds = array<i64: 1, 2, 8, 16>}, {transform_indices = @transform_5, window_bounds = array<i64: 1, 2, 8, 16>}, {transform_indices = @transform_6, window_bounds = array<i64: 1, 2, 8, 16>}]} {
    %c0 = arith.constant 0 : index
    %c0_0 = arith.constant 0 : index
    %c0_1 = arith.constant 0 : index
    %0 = vector.load %arg2[%c0, %c0_0, %c0_1] : memref<1x8x32xf32, #tpu.memory_space<vmem>>, vector<1x8x32xf32>
    %1 = vector.shape_cast %0 : vector<1x8x32xf32> to vector<8x32xf32>
    %c0_2 = arith.constant 0 : index
    %c0_3 = arith.constant 0 : index
    %2 = vector.load %arg3[%c0_2, %c0_3] : memref<32x32xf32, #tpu.memory_space<vmem>>, vector<32x32xf32>
    %cst = arith.constant dense<0.000000e+00> : vector<8x32xf32>
    %3 = tpu.matmul %1, %2, %cst {dimension_numbers = #tpu.dot_dimension_numbers<[1], [0], [0], [1], [0, 0, 1, 1], [], []>} : vector<8x32xf32>, vector<32x32xf32>, vector<8x32xf32> -> vector<8x32xf32>
    %cst_4 = arith.constant 2.500000e-01 : f32
    %4 = vector.broadcast %cst_4 : f32 to vector<8x32xf32>
    %5 = arith.mulf %3, %4 : vector<8x32xf32>
    %c0_5 = arith.constant 0 : index
    %c0_6 = arith.constant 0 : index
    %6 = vector.load %arg4[%c0_5, %c0_6] : memref<32x32xf32, #tpu.memory_space<vmem>>, vector<32x32xf32>
    %cst_7 = arith.constant dense<0.000000e+00> : vector<8x32xf32>
    %7 = tpu.matmul %1, %6, %cst_7 {dimension_numbers = #tpu.dot_dimension_numbers<[1], [0], [0], [1], [0, 0, 1, 1], [], []>} : vector<8x32xf32>, vector<32x32xf32>, vector<8x32xf32> -> vector<8x32xf32>
    %c0_8 = arith.constant 0 : index
    %c0_9 = arith.constant 0 : index
    %8 = vector.load %arg5[%c0_8, %c0_9] : memref<32x32xf32, #tpu.memory_space<vmem>>, vector<32x32xf32>
    %cst_10 = arith.constant dense<0.000000e+00> : vector<8x32xf32>
    %9 = tpu.matmul %1, %8, %cst_10 {dimension_numbers = #tpu.dot_dimension_numbers<[1], [0], [0], [1], [0, 0, 1, 1], [], []>} : vector<8x32xf32>, vector<32x32xf32>, vector<8x32xf32> -> vector<8x32xf32>
    %10 = vector.extract_strided_slice %5 {offsets = [0, 0], sizes = [8, 16], strides = [1, 1]} : vector<8x32xf32> to vector<8x16xf32>
    %c0_11 = arith.constant 0 : index
    %c0_12 = arith.constant 0 : index
    %c0_13 = arith.constant 0 : index
    %c0_14 = arith.constant 0 : index
    %11 = vector.load %arg6[%c0_11, %c0_12, %c0_13, %c0_14] : memref<1x2x8x16xf32, #tpu.memory_space<vmem>>, vector<1x1x8x16xf32>
    %12 = vector.shape_cast %11 : vector<1x1x8x16xf32> to vector<8x16xf32>
    %13 = vector.shape_cast %10 : vector<8x16xf32> to vector<1x1x8x16xf32>
    tpu.vector_store %arg6[%c0_11, %c0_12, %c0_13, %c0_14], %13 {strides = array<i32>} : memref<1x2x8x16xf32, #tpu.memory_space<vmem>>, vector<1x1x8x16xf32>,
    %14 = vector.extract_strided_slice %7 {offsets = [0, 0], sizes = [8, 16], strides = [1, 1]} : vector<8x32xf32> to vector<8x16xf32>
    %c0_15 = arith.constant 0 : index
    %c0_16 = arith.constant 0 : index
    %c0_17 = arith.constant 0 : index
    %c0_18 = arith.constant 0 : index
    %15 = vector.load %arg7[%c0_15, %c0_16, %c0_17, %c0_18] : memref<1x2x8x16xf32, #tpu.memory_space<vmem>>, vector<1x1x8x16xf32>
    %16 = vector.shape_cast %15 : vector<1x1x8x16xf32> to vector<8x16xf32>
    %17 = vector.shape_cast %14 : vector<8x16xf32> to vector<1x1x8x16xf32>
    tpu.vector_store %arg7[%c0_15, %c0_16, %c0_17, %c0_18], %17 {strides = array<i32>} : memref<1x2x8x16xf32, #tpu.memory_space<vmem>>, vector<1x1x8x16xf32>,
    %18 = vector.extract_strided_slice %9 {offsets = [0, 0], sizes = [8, 16], strides = [1, 1]} : vector<8x32xf32> to vector<8x16xf32>
    %c0_19 = arith.constant 0 : index
    %c0_20 = arith.constant 0 : index
    %c0_21 = arith.constant 0 : index
    %c0_22 = arith.constant 0 : index
    %19 = vector.load %arg8[%c0_19, %c0_20, %c0_21, %c0_22] : memref<1x2x8x16xf32, #tpu.memory_space<vmem>>, vector<1x1x8x16xf32>
    %20 = vector.shape_cast %19 : vector<1x1x8x16xf32> to vector<8x16xf32>
    %21 = vector.shape_cast %18 : vector<8x16xf32> to vector<1x1x8x16xf32>
    tpu.vector_store %arg8[%c0_19, %c0_20, %c0_21, %c0_22], %21 {strides = array<i32>} : memref<1x2x8x16xf32, #tpu.memory_space<vmem>>, vector<1x1x8x16xf32>,
    %22 = vector.extract_strided_slice %5 {offsets = [0, 16], sizes = [8, 16], strides = [1, 1]} : vector<8x32xf32> to vector<8x16xf32>
    %c0_23 = arith.constant 0 : index
    %c1 = arith.constant 1 : index
    %c0_24 = arith.constant 0 : index
    %c0_25 = arith.constant 0 : index
    %23 = vector.load %arg6[%c0_23, %c1, %c0_24, %c0_25] : memref<1x2x8x16xf32, #tpu.memory_space<vmem>>, vector<1x1x8x16xf32>
    %24 = vector.shape_cast %23 : vector<1x1x8x16xf32> to vector<8x16xf32>
    %25 = vector.shape_cast %22 : vector<8x16xf32> to vector<1x1x8x16xf32>
    tpu.vector_store %arg6[%c0_23, %c1, %c0_24, %c0_25], %25 {strides = array<i32>} : memref<1x2x8x16xf32, #tpu.memory_space<vmem>>, vector<1x1x8x16xf32>,
    %26 = vector.extract_strided_slice %7 {offsets = [0, 16], sizes = [8, 16], strides = [1, 1]} : vector<8x32xf32> to vector<8x16xf32>
    %c0_26 = arith.constant 0 : index
    %c1_27 = arith.constant 1 : index
    %c0_28 = arith.constant 0 : index
    %c0_29 = arith.constant 0 : index
    %27 = vector.load %arg7[%c0_26, %c1_27, %c0_28, %c0_29] : memref<1x2x8x16xf32, #tpu.memory_space<vmem>>, vector<1x1x8x16xf32>
    %28 = vector.shape_cast %27 : vector<1x1x8x16xf32> to vector<8x16xf32>
    %29 = vector.shape_cast %26 : vector<8x16xf32> to vector<1x1x8x16xf32>
    tpu.vector_store %arg7[%c0_26, %c1_27, %c0_28, %c0_29], %29 {strides = array<i32>} : memref<1x2x8x16xf32, #tpu.memory_space<vmem>>, vector<1x1x8x16xf32>,
    %30 = vector.extract_strided_slice %9 {offsets = [0, 16], sizes = [8, 16], strides = [1, 1]} : vector<8x32xf32> to vector<8x16xf32>
    %c0_30 = arith.constant 0 : index
    %c1_31 = arith.constant 1 : index
    %c0_32 = arith.constant 0 : index
    %c0_33 = arith.constant 0 : index
    %31 = vector.load %arg8[%c0_30, %c1_31, %c0_32, %c0_33] : memref<1x2x8x16xf32, #tpu.memory_space<vmem>>, vector<1x1x8x16xf32>
    %32 = vector.shape_cast %31 : vector<1x1x8x16xf32> to vector<8x16xf32>
    %33 = vector.shape_cast %30 : vector<8x16xf32> to vector<1x1x8x16xf32>
    tpu.vector_store %arg8[%c0_30, %c1_31, %c0_32, %c0_33], %33 {strides = array<i32>} : memref<1x2x8x16xf32, #tpu.memory_space<vmem>>, vector<1x1x8x16xf32>,
    return
  }
  func.func @transform_0(%arg0: i32, %arg1: i32) -> (i32, i32, i32) {
    %c0_i32 = arith.constant 0 : i32
    %c0_i32_0 = arith.constant 0 : i32
    return %arg0, %arg1, %c0_i32 : i32, i32, i32
  }
  func.func @transform_1(%arg0: i32, %arg1: i32) -> (i32, i32) {
    %c0_i32 = arith.constant 0 : i32
    %c0_i32_0 = arith.constant 0 : i32
    %c0_i32_1 = arith.constant 0 : i32
    return %c0_i32, %c0_i32_0 : i32, i32
  }
  func.func @transform_2(%arg0: i32, %arg1: i32) -> (i32, i32) {
    %c0_i32 = arith.constant 0 : i32
    %c0_i32_0 = arith.constant 0 : i32
    %c0_i32_1 = arith.constant 0 : i32
    return %c0_i32, %c0_i32_0 : i32, i32
  }
  func.func @transform_3(%arg0: i32, %arg1: i32) -> (i32, i32) {
    %c0_i32 = arith.constant 0 : i32
    %c0_i32_0 = arith.constant 0 : i32
    %c0_i32_1 = arith.constant 0 : i32
    return %c0_i32, %c0_i32_0 : i32, i32
  }
  func.func @transform_4(%arg0: i32, %arg1: i32) -> (i32, i32, i32, i32) {
    %c0_i32 = arith.constant 0 : i32
    %c0_i32_0 = arith.constant 0 : i32
    %c0_i32_1 = arith.constant 0 : i32
    return %arg0, %c0_i32, %arg1, %c0_i32_0 : i32, i32, i32, i32
  }
  func.func @transform_5(%arg0: i32, %arg1: i32) -> (i32, i32, i32, i32) {
    %c0_i32 = arith.constant 0 : i32
    %c0_i32_0 = arith.constant 0 : i32
    %c0_i32_1 = arith.constant 0 : i32
    return %arg0, %c0_i32, %arg1, %c0_i32_0 : i32, i32, i32, i32
  }
  func.func @transform_6(%arg0: i32, %arg1: i32) -> (i32, i32, i32, i32) {
    %c0_i32 = arith.constant 0 : i32
    %c0_i32_0 = arith.constant 0 : i32
    %c0_i32_1 = arith.constant 0 : i32
    return %arg0, %c0_i32, %arg1, %c0_i32_0 : i32, i32, i32, i32
  }
}

</mosaic_0001>

<bundles_post_ra>
// kernel: tpu_custom_call.1
= control target key start
LH: loop header
LB: loop body
LE: loop exit
PB: predicated region body
PF: predicated region fallthrough
CT: control target
= control target key end

     0   :  { %s1406_s0 = inlined_call_operand.hbm [shape: f32[2,8,32], index: 0, kind: input, shape index: {}]   ;;  %s1407_s1 = inlined_call_operand.hbm [shape: f32[32,32], index: 1, kind: input, shape index: {}]   ;;  %s1408_s2 = inlined_call_operand.hbm [shape: f32[32,32], index: 2, kind: input, shape index: {}]   ;;  %s1409_s3 = inlined_call_operand.hbm [shape: f32[32,32], index: 3, kind: input, shape index: {}]   ;;  %s1410_s4 = inlined_call_operand.hbm [shape: f32[2,2,8,16], index: 4, kind: output, shape index: {0}]   ;;  %s1411_s5 = inlined_call_operand.hbm [shape: f32[2,2,8,16], index: 5, kind: output, shape index: {1}]   ;;  %s1412_s6 = inlined_call_operand.hbm [shape: f32[2,2,8,16], index: 6, kind: output, shape index: {2}]  }
   0x1   :  { %1416 = sst [smem:[#allocation21_spill]] %s1406_s0 }
   0x2   :  { %1417 = sst [smem:[#allocation22_spill]] %s1407_s1 }
   0x3   :  { %1418 = sst [smem:[#allocation23_spill]] %s1408_s2 }
   0x4   :  { %1419 = sst [smem:[#allocation24_spill]] %s1409_s3 }
   0x5   :  { %12 = vsyncpa [#allocation3], 0 }
   0x6   :  { %14 = vsyncpa [#allocation3 + $0x1], 0 }
   0x7   :  { %15 = vsyncpa [#allocation6], 0 }
   0x8   :  { %16 = vsyncpa [#allocation9], 0 }
   0x9   :  { %17 = vsyncpa [#allocation4], 0 }
   0xa   :  { %19 = vsyncpa [#allocation4 + $0x1], 0 }
   0xb   :  { %20 = vsyncpa [#allocation12], 0 }
   0xc   :  { %22 = vsyncpa [#allocation12 + $0x1], 0  ;;  %s1161_s21 = smov 0   ;;  %s1163_s22 = smov 0  }
   0xd   :  { %s1165_s23 = smov 0   ;;  %s1167_s24 = smov 0  }
   0xe   :  { %s1169_s25 = smov 0   ;;  %s1171_s26 = smov 0  }
   0xf LB: > { %1420 = sst [smem:[#allocation19_spill]] %s1112_s25  ;;  %s1192_s27 = sadd.s32 4294967295, %s1116_s26   ;;  %s1116_s26 = sphi %s1171_s26, %s28_s26   ;;  %s1112_s25 = sphi %s1169_s25, %s1434_s25   ;;  %s1108_s24 = sphi %s1167_s24, %s1433_s24   ;;  %s1104_s23 = sphi %s1165_s23, %s1437_s23   ;;  %s1100_s22 = sphi %s1163_s22, %s1436_s22   ;;  %s1096_s21 = sphi %s1161_s21, %s1435_s21  }
  0x10   : > { %p703_p0 = scmp.ge.s32.totalorder %s1116_s26, 1  ;;  %p63_p1 = scmp.eq.s32.totalorder %s1192_s27, 0 }
  0x11   : > { %p220_p2 = scmp.lt.s32.totalorder %s1116_s26, 3  ;;  %s1421_s1 = sld [smem:[#allocation22_spill]] }
  0x12   : > { %s1118_s8 = smov [#allocation5]   ;;  %p707_p6 = scmp.ge.s32.totalorder %s1116_s26, 2 }
  0x13   : > { %p1200_p3 = pnand %p703_p0, %p220_p2  ;;  %s233_s9 = sshll.u32 %s1118_s8, 4  ;;  %s234_s9 = int_to_ptr.vmem [resolvable:$true] %s233_s9 }
  0x14   : > { %s1424_s2 = sld [smem:[#allocation23_spill]]  ;;  %s1119_s14 = smov 128  }
  0x15   : > { %p758_p4 = pneg %p1200_p3  ;;  %s1120_s15 = smov 8  }
  0x16   : > { %s1121_s16 = smov [#allocation7]   ;;  %s1425_s3 = sld [smem:[#allocation24_spill]] }
  0x17   : > { %s231_s30 = sshll.u32 %s1421_s1, 4  ;;  %p1208_p5 = pnand %p758_p4, %p63_p1  ;;  %s232_s30 = int_to_ptr.hbm [resolvable:$true] %s231_s30 }
  0x18   : > { %s247_s17 = sshll.u32 %s1121_s16, 4  ;;  %s1122_s28 = smov [#allocation8]   ;;  %s248_s17 = int_to_ptr.vmem [resolvable:$true] %s247_s17 }
  0x19   : > { %761 = dma.hbm_to_vmem [thread:$0]  (!%p1208_p5), %s232_s30, 512, %s234_s9, [#allocation6], %s1119_s14, %s1119_s14, %s1120_s15  }
  0x1a   : > { %s245_s13 = sshll.u32 %s1424_s2, 4  ;;  %s261_s29 = sshll.u32 %s1122_s28, 4  ;;  %s246_s13 = int_to_ptr.hbm [resolvable:$true] %s245_s13  ;;  %s262_s29 = int_to_ptr.vmem [resolvable:$true] %s261_s29 }
  0x1b   : > { %764 = dma.hbm_to_vmem [thread:$0]  (!%p1208_p5), %s246_s13, 512, %s248_s17, [#allocation6], %s1119_s14, %s1119_s14, %s1120_s15  }
  0x1c   : > { %s259_s20 = sshll.u32 %s1425_s3, 4  ;;  %s1413_s30 = sadd.s32 4294967294, %s1116_s26   ;;  %s260_s20 = int_to_ptr.hbm [resolvable:$true] %s259_s20 }
  0x1d   : > { %767 = dma.hbm_to_vmem [thread:$0]  (!%p1208_p5), %s260_s20, 512, %s262_s29, [#allocation9], %s1119_s14, %s1119_s14, %s1120_s15  }
  0x1e   : > { %s40_s8 = sadd.s32 1, %s1112_s25  ;;  %s49_s9 = sadd.s32 1, %s1104_s23 }
  0x1f   : > { %p42_p7 = scmp.ge.s32.totalorder %s40_s8, 2  ;;  %p56_p8 = scmp.ne.s32.totalorder %s1104_s23, %s1100_s22 }
  0x20   : > { %p57_p9 = scmp.eq.s32.totalorder %s1116_s26, 0  ;;  %p62_p10 = scmp.ne.s32.totalorder %s1100_s22, %s1096_s21 }
  0x21   : > { %s1439_s8 = smov (%p42_p7, %s40_s8), 0  ;;  %p151_p13 = scmp.eq.s32.totalorder %s1192_s27, 1 }
  0x22   : > { %1426 = sst [smem:[#allocation20_spill]] %s1439_s8  ;;  %p1235_p11 = por %p57_p9, %p56_p8 }
  0x23   : > { %p1241_p12 = por %p63_p1, %p62_p10  ;;  %s44_s12 = ssub.s32 %s1112_s25, %s1439_s8 }
  0x24   : > { %p47_p0 = scmp.eq.s32.totalorder %s44_s12, 0  ;;  %p157_p2 = scmp.eq.s32.totalorder %s1413_s30, 1 }
  0x25   : > { %p1250_p4 = por %p151_p13, %p56_p8  ;;  %p785_p5 = scmp.lt.s32.totalorder %s1116_s26, 2 }
  0x26   : > { %s1256_s14 = scalar_select %p47_p0, %s1104_s23, %s49_s9  }
  0x27   : > { %p1258_p7 = por %p157_p2, %p62_p10  ;;  %s275_s16 = sand.u32 1, %s1104_s23  }
  0x28   : > { %s708_s17 = sshll.u32 %s275_s16, 3  ;;  %s709_s18 = sshll.u32 %s1112_s25, 3 }
  0x29   : > { %s1431_s0 = sld [smem:[#allocation21_spill]]  ;;  %s279_s29 = scalar_lea.vmem [#allocation2], %s708_s17 }
  0x2a   : > { %s288_s12 = sshll.u32 %s279_s29, 4  ;;  %p769_p8 = pnand %p785_p5, %p1235_p11  ;;  %s289_s12 = int_to_ptr.vmem [resolvable:$true] %s288_s12 }
  0x2b   : > { %s276_s9 = scalar_lea.sflag [#allocation3], %s275_s16  ;;  %s1272_s1 = sand.u32 (!%p1200_p3), 1, %s1100_s22  }
  0x2c   : > { %s711_s19 = sshll.u32 (!%p1200_p3), %s1272_s1, 3 }
  0x2d   : > { %297 = sbr.rel (%p1200_p3) target bundleno = 333 (0x14d), region = 36  ;;  %s303_s17 = scalar_lea.vmem (!%p1200_p3), [#allocation2], %s711_s19 }
  0x2f   : > { %s284_s28 = scalar_lea.hbm %s1431_s0, %s709_s18  ;;  %s300_s18 = scalar_lea.sflag (!%p1200_p3), [#allocation3], %s1272_s1 }
  0x30   : > { %s286_s30 = sshll.u32 %s284_s28, 4  ;;  %s287_s30 = int_to_ptr.hbm [resolvable:$true] %s286_s30 }
  0x31   : > { %771 = dma.hbm_to_vmem [thread:$0]  (!%p769_p8), %s287_s30, 128, %s289_s12, %s276_s9  }
  0x32   : > { %1075 = dma.done.wait (%p1241_p12), %s300_s18, 128  }
  0x33   : > { %1077 = vsyncadd (%p1241_p12), %s300_s18, 4294967168 }
  0x34   : > { %1079 = dma.done.wait (%p63_p1), [#allocation6], 1024  }
  0x35   : > { %1081 = vsyncadd (%p63_p1), [#allocation6], 4294966272 }
  0x36   : > { %1083 = dma.done.wait (%p63_p1), [#allocation9], 512  }
  0x37   : > { %1085 = vsyncadd (%p63_p1), [#allocation9], 4294966784  ;;  %v391_v0 = vld [vmem:[#allocation7 + $0x18] sm:$0xff]  ;;  %v390_v1 = vld [vmem:[#allocation7 + $0x10] sm:$0xff]  ;;  %vm363_vm0 = vcmask 261120   ;;  %s715_s7 = sshll.u32 %s1272_s1, 4 }
  0x38   : > { %v415_v2 = vld [vmem:[#allocation8 + $0x18] sm:$0xff]  ;;  %404 = vmatpush.msra.mxu1 %v391_v0  ;;  %v414_v3 = vld [vmem:[#allocation8 + $0x10] sm:$0xff]  ;;  %v389_v5 = vld [vmem:[#allocation7 + $0x8] sm:$0xff]  ;;  %vm436_vm1 = vcmask 130048   ;;  %s350_s30 = scalar_lea.vmem [#allocation11], %s715_s7  ;;  %s1123_s11 = smov 112  }
  0x39   : > { %428 = vmatpush.msra.mxu2 %v415_v2  ;;  %v362_v4 = vld [vmem:[#allocation5 + $0x18] sm:$0xff]  ;;  %v413_v6 = vld [vmem:[#allocation8 + $0x8] sm:$0xff]  ;;  %v361_v7 = vld [vmem:[#allocation5 + $0x10] sm:$0xff]  ;;  %s1290_s10 = scalar_lea.vmem [#allocation10], %s715_s7  ;;  %s1294_s16 = scalar_lea.vmem [#allocation13], %s715_s7 }
  0x3a   : > { %379 = vmatpush.msra.mxu0 %v362_v4  ;;  %405 = vmatpush.msra.mxu1 %v390_v1  ;;  %v360_v8 = vld [vmem:[#allocation5 + $0x8] sm:$0xff]  ;;  %v388_v9 = vld [vmem:[#allocation7] sm:$0xff]  ;;  %v358_v11 = vld [vmem:[%s303_s17] sm:$0xff]  ;;  %s1299_s20 = sshll.u32 %s1108_s24, 4  ;;  %s500_s9 = sshll.u32 %s350_s30, 4  ;;  %s501_s9 = int_to_ptr.vmem [resolvable:$true] %s500_s9 }
  0x3b   : > { %429 = vmatpush.msra.mxu2 %v414_v3  ;;  %v412_v10 = vld [vmem:[#allocation8] sm:$0xff]  ;;  %s499_s12 = scalar_lea.hbm %s1411_s5, %s1299_s20  ;;  %s463_s19 = sand.u32 1, %s1192_s27  }
  0x3c   : > { %380 = vmatpush.msra.mxu0 %v361_v7  ;;  %406 = vmatpush.msra.mxu1 %v389_v5  ;;  %v359_v12 = vld [vmem:[#allocation5] sm:$0xff]  ;;  %s1306_s18 = sshll.u32 %s499_s12, 4  ;;  %s518_s24 = sshll.u32 %s1294_s16, 4  ;;  %s503_s18 = int_to_ptr.hbm [resolvable:$true] %s1306_s18  ;;  %s519_s24 = int_to_ptr.vmem [resolvable:$true] %s518_s24 }
  0x3d   : > { %430 = vmatpush.msra.mxu2 %v413_v6  ;;  %s481_s0 = scalar_lea.hbm %s1410_s4, %s1299_s20  ;;  %s1321_s27 = scalar_lea.sflag [#allocation12], %s463_s19 }
  0x3e   : > { %381 = vmatpush.msra.mxu0 %v360_v8  ;;  %407 = vmatpush.msra.mxu1 %v388_v9  ;;  %s980_s12 = sshra.s32 %s503_s18, 4  ;;  %s986_s8 = scalar_lea.hbm %s1411_s5, 32  ;;  %s981_s12 = int_to_ptr.hbm [resolvable:$true] %s980_s12 }
  0x3f   : > { %431 = vmatpush.msra.mxu2 %v412_v10  ;;  %719 = vmatmul.msk.f32.vlgmr.msra.gmra.mxu1 %vm363_vm0, %v358_v11  ;;  %s982_s3 = scalar_lea.hbm %s981_s12, 16  ;;  %p987_p10 = scmp.lt.s32.totalorder %s981_s12, %s1411_s5 }
  0x40   : > { %720 = vmatmul.msk.f32.vlgmr.msra.gmra.mxu2 %vm363_vm0, %v358_v11  ;;  %382 = vmatpush.msra.mxu0 %v359_v12  ;;  %p983_p1 = scmp.ne.s32.totalorder %s981_s12, %s982_s3  ;;  %p988_p11 = scmp.lt.s32.totalorder %s986_s8, %s982_s3 }
  0x41   : > { %718 = vmatmul.msk.f32.vlgmr.msra.gmra.mxu0 %vm363_vm0, %v358_v11 }
  0x42   : > { %p984_p3 = pnand %p983_p1, %p1250_p4  ;;  %p989_p12 = por %p988_p11, %p987_p10 }
  0x44   : > { %p985_p9 = pneg %p984_p3 }
  0x46   : > { %p990_p13 = pnand %p989_p12, %p985_p9 }
  0xbc   : > { %v409_v13 = vpop.f32.mrf.mxu1 }
  0xbd   : > { %438 = vst.msk [vmem:[%s350_s30] sm:$0xff] %vm436_vm1, %v409_v13  ;;  %447 = vrot.lane.b32.xlu0 %v409_v13, %s1123_s11 }
  0xbe   : > { %v384_v14 = vpop.f32.mrf.mxu0 }
  0xbf   : > { %v387_v15 = vmul.f32 0.25, %v384_v14 }
  0xc1   : > { %437 = vst.msk [vmem:[%s1290_s10] sm:$0xff] %vm436_vm1, %v387_v15 }
  0xc3   : > { %v433_v16 = vpop.f32.mrf.mxu2 }
  0xc4   : > { %439 = vst.msk [vmem:[%s1294_s16] sm:$0xff] %vm436_vm1, %v433_v16  ;;  %453 = vrot.lane.b32.xlu1 %v433_v16, %s1123_s11 }
  0xc5   : > { %441 = vrot.lane.b32.xlu0 %v387_v15, %s1123_s11  ;;  %s517_s11 = scalar_lea.hbm %s1412_s6, %s1299_s20 }
  0xc6   : > { %s1319_s2 = sshll.u32 %s517_s11, 4  ;;  %s521_s2 = int_to_ptr.hbm [resolvable:$true] %s1319_s2 }
 0x12f   : > { %v448_v17 = vpop.permute.xlu0 %447 }
 0x130   : > { %722 = vst.msk [vmem:[%s350_s30 + $0x8] sm:$0xff] %vm436_vm1, %v448_v17 }
 0x131   : > { %993 = shalt.err (!%p990_p13)
}
 0x132   : > { %s1124_s20 = smov 128   ;;  %s1125_s19 = smov 8  }
 0x133   : > { %753 = dma.vmem_to_hbm [thread:$0]  (%p1250_p4), %s501_s9, 256, %s503_s18, %s1321_s27, %s1124_s20, %s1124_s20, %s1125_s19  }
 0x134   : > { %s482_s11 = sshll.u32 %s1290_s10, 4  ;;  %s1338_s25 = sshll.u32 %s481_s0, 4  ;;  %s1341_s11 = int_to_ptr.vmem [resolvable:$true] %s482_s11  ;;  %s485_s25 = int_to_ptr.hbm [resolvable:$true] %s1338_s25 }
 0x135   : > { %s1008_s3 = sshra.s32 %s521_s2, 4  ;;  %s1014_s18 = scalar_lea.hbm %s1412_s6, 32  ;;  %s1009_s3 = int_to_ptr.hbm [resolvable:$true] %s1008_s3 }
 0x136   : > { %v454_v18 = vpop.permute.xlu1 %453  ;;  %s1010_s8 = scalar_lea.hbm %s1009_s3, 16  ;;  %p1015_p8 = scmp.lt.s32.totalorder %s1009_s3, %s1412_s6 }
 0x137   : > { %723 = vst.msk [vmem:[%s1294_s16 + $0x8] sm:$0xff] %vm436_vm1, %v454_v18  ;;  %v442_v19 = vpop.permute.xlu0 %441  ;;  %p1011_p0 = scmp.ne.s32.totalorder %s1009_s3, %s1010_s8  ;;  %p1016_p1 = scmp.lt.s32.totalorder %s1014_s18, %s1010_s8 }
 0x139   : > { %p1012_p2 = pnand %p1011_p0, %p1250_p4  ;;  %p1017_p3 = por %p1016_p1, %p1015_p8 }
 0x13b   : > { %p1013_p5 = pneg %p1012_p2 }
 0x13d   : > { %p1018_p9 = pnand %p1017_p3, %p1013_p5 }
 0x13f   : > { %1021 = shalt.err (!%p1018_p9)
}
 0x140   : > { %754 = dma.vmem_to_hbm [thread:$0]  (%p1250_p4), %s519_s24, 256, %s521_s2, %s1321_s27, %s1124_s20, %s1124_s20, %s1125_s19  }
 0x141   : > { %721 = vst.msk [vmem:[%s1290_s10 + $0x8] sm:$0xff] %vm436_vm1, %v442_v19  ;;  %s459_s16 = scalar_lea.sflag [#allocation4], %s1272_s1  ;;  %s1036_s12 = sshra.s32 %s485_s25, 4  ;;  %s1037_s12 = int_to_ptr.hbm [resolvable:$true] %s1036_s12 }
 0x142   : > { %s1038_s17 = scalar_lea.hbm %s1037_s12, 16  ;;  %s1042_s3 = scalar_lea.hbm %s1410_s4, 32 }
 0x143   : > { %p1039_p10 = scmp.ne.s32.totalorder %s1037_s12, %s1038_s17  ;;  %p1043_p13 = scmp.lt.s32.totalorder %s1037_s12, %s1410_s4 }
 0x144   : > { %p1044_p0 = scmp.lt.s32.totalorder %s1042_s3, %s1038_s17 }
 0x145   : > { %p1040_p11 = pnand %p1039_p10, %p1250_p4 }
 0x146   : > { %p1045_p2 = por %p1044_p0, %p1043_p13 }
 0x147   : > { %p1041_p12 = pneg %p1040_p11 }
 0x149   : > { %p1046_p5 = pnand %p1045_p2, %p1041_p12 }
 0x14b   : > { %1049 = shalt.err (!%p1046_p5)
}
 0x14c   : > { %752 = dma.vmem_to_hbm [thread:$0]  (%p1250_p4), %s1341_s11, 256, %s485_s25, %s459_s16, %s1124_s20, %s1124_s20, %s1125_s19  }
 0x14d PF: > { %s535_s1 = sand.u32 1, %s1096_s21   ;;  %p773_p8 = pnand %p707_p6, %p1258_p7 }
 0x14e   : > { %s536_s2 = scalar_lea.sflag [#allocation4], %s535_s1 }
 0x14f   : > { %p774_p1 = pneg %p773_p8 }
 0x151   : > { %1087 = dma.done.wait (%p774_p1), %s536_s2, 256  }
 0x152   : > { %1089 = vsyncadd (%p774_p1), %s536_s2, 4294967040  ;;  %s1432_s13 = sadd.s32 4294967294, %s1116_s26  }
 0x153   : > { %s545_s10 = sand.u32 1, %s1432_s13  }
 0x154   : > { %s546_s24 = scalar_lea.sflag [#allocation12], %s545_s10 }
 0x155   : > { %1091 = dma.done.wait (%p774_p1), %s546_s24, 512  }
 0x156   : > { %1093 = vsyncadd (%p774_p1), %s546_s24, 4294966784  ;;  %s28_s26 = sadd.s32 1, %s1116_s26   ;;  %s1433_s24 = sld [smem:[#allocation19_spill]] }
 0x157   : > { %p25_p4 = scmp.ge.s32.totalorder %s28_s26, 4   ;;  %s1434_s25 = sld [smem:[#allocation20_spill]] }
 0x158   : > { %s1435_s21 = smov %s1100_s22  ;;  %s1436_s22 = smov %s1104_s23 }
 0x159   : > { %s1437_s23 = smov %s1256_s14  ;;  %27 = sbr.rel (!%p25_p4) target bundleno = 15 (0xf), region = 128 }
 0x15e   :  { %562 = vsyncpa [#allocation3], 1 }
 0x15f   :  { %564 = vsyncpa [#allocation3 + $0x1], 1 }
 0x160   :  { %565 = vsyncpa [#allocation6], 1 }
 0x161   :  { %566 = vsyncpa [#allocation9], 1 }
 0x162   :  { %567 = vsyncpa [#allocation4], 1 }
 0x163   :  { %569 = vsyncpa [#allocation4 + $0x1], 1 }
 0x164   :  { %570 = vsyncpa [#allocation12], 1 }
 0x165   :  { %572 = vsyncpa [#allocation12 + $0x1], 1 }

// kernel: tpu_custom_call.1
= control target key start
LH: loop header
LB: loop body
LE: loop exit
PB: predicated region body
PF: predicated region fallthrough
CT: control target
= control target key end

     0   :  { %s1406_s0 = inlined_call_operand.hbm [shape: f32[2,8,32], index: 0, kind: input, shape index: {}]   ;;  %s1407_s1 = inlined_call_operand.hbm [shape: f32[32,32], index: 1, kind: input, shape index: {}]   ;;  %s1408_s2 = inlined_call_operand.hbm [shape: f32[32,32], index: 2, kind: input, shape index: {}]   ;;  %s1409_s3 = inlined_call_operand.hbm [shape: f32[32,32], index: 3, kind: input, shape index: {}]   ;;  %s1410_s4 = inlined_call_operand.hbm [shape: f32[2,2,8,16], index: 4, kind: output, shape index: {0}]   ;;  %s1411_s5 = inlined_call_operand.hbm [shape: f32[2,2,8,16], index: 5, kind: output, shape index: {1}]   ;;  %s1412_s6 = inlined_call_operand.hbm [shape: f32[2,2,8,16], index: 6, kind: output, shape index: {2}]  }
   0x1   :  { %1416 = sst [smem:[#allocation21_spill]] %s1406_s0 }
   0x2   :  { %1417 = sst [smem:[#allocation22_spill]] %s1407_s1 }
   0x3   :  { %1418 = sst [smem:[#allocation23_spill]] %s1408_s2 }
   0x4   :  { %1419 = sst [smem:[#allocation24_spill]] %s1409_s3 }
   0x5   :  { %12 = vsyncpa [#allocation3], 0 }
   0x6   :  { %14 = vsyncpa [#allocation3 + $0x1], 0 }
   0x7   :  { %15 = vsyncpa [#allocation6], 0 }
   0x8   :  { %16 = vsyncpa [#allocation9], 0 }
   0x9   :  { %17 = vsyncpa [#allocation4], 0 }
   0xa   :  { %19 = vsyncpa [#allocation4 + $0x1], 0 }
   0xb   :  { %20 = vsyncpa [#allocation12], 0 }
   0xc   :  { %22 = vsyncpa [#allocation12 + $0x1], 0  ;;  %s1161_s21 = smov 0   ;;  %s1163_s22 = smov 0  }
   0xd   :  { %s1165_s23 = smov 0   ;;  %s1167_s24 = smov 0  }
   0xe   :  { %s1169_s25 = smov 0   ;;  %s1171_s26 = smov 0  }
   0xf LB: > { %1420 = sst [smem:[#allocation19_spill]] %s1112_s25  ;;  %s1192_s27 = sadd.s32 4294967295, %s1116_s26   ;;  %s1116_s26 = sphi %s1171_s26, %s28_s26   ;;  %s1112_s25 = sphi %s1169_s25, %s1434_s25   ;;  %s1108_s24 = sphi %s1167_s24, %s1433_s24   ;;  %s1104_s23 = sphi %s1165_s23, %s1437_s23   ;;  %s1100_s22 = sphi %s1163_s22, %s1436_s22   ;;  %s1096_s21 = sphi %s1161_s21, %s1435_s21  }
  0x10   : > { %p703_p0 = scmp.ge.s32.totalorder %s1116_s26, 1  ;;  %p63_p1 = scmp.eq.s32.totalorder %s1192_s27, 0 }
  0x11   : > { %p220_p2 = scmp.lt.s32.totalorder %s1116_s26, 3  ;;  %s1421_s1 = sld [smem:[#allocation22_spill]] }
  0x12   : > { %s1118_s8 = smov [#allocation5]   ;;  %p707_p6 = scmp.ge.s32.totalorder %s1116_s26, 2 }
  0x13   : > { %p1200_p3 = pnand %p703_p0, %p220_p2  ;;  %s233_s9 = sshll.u32 %s1118_s8, 4  ;;  %s234_s9 = int_to_ptr.vmem [resolvable:$true] %s233_s9 }
  0x14   : > { %s1424_s2 = sld [smem:[#allocation23_spill]]  ;;  %s1119_s14 = smov 128  }
  0x15   : > { %p758_p4 = pneg %p1200_p3  ;;  %s1120_s15 = smov 8  }
  0x16   : > { %s1121_s16 = smov [#allocation7]   ;;  %s1425_s3 = sld [smem:[#allocation24_spill]] }
  0x17   : > { %s231_s30 = sshll.u32 %s1421_s1, 4  ;;  %p1208_p5 = pnand %p758_p4, %p63_p1  ;;  %s232_s30 = int_to_ptr.hbm [resolvable:$true] %s231_s30 }
  0x18   : > { %s247_s17 = sshll.u32 %s1121_s16, 4  ;;  %s1122_s28 = smov [#allocation8]   ;;  %s248_s17 = int_to_ptr.vmem [resolvable:$true] %s247_s17 }
  0x19   : > { %761 = dma.hbm_to_vmem [thread:$0]  (!%p1208_p5), %s232_s30, 512, %s234_s9, [#allocation6], %s1119_s14, %s1119_s14, %s1120_s15  }
  0x1a   : > { %s245_s13 = sshll.u32 %s1424_s2, 4  ;;  %s261_s29 = sshll.u32 %s1122_s28, 4  ;;  %s246_s13 = int_to_ptr.hbm [resolvable:$true] %s245_s13  ;;  %s262_s29 = int_to_ptr.vmem [resolvable:$true] %s261_s29 }
  0x1b   : > { %764 = dma.hbm_to_vmem [thread:$0]  (!%p1208_p5), %s246_s13, 512, %s248_s17, [#allocation6], %s1119_s14, %s1119_s14, %s1120_s15  }
  0x1c   : > { %s259_s20 = sshll.u32 %s1425_s3, 4  ;;  %s1413_s30 = sadd.s32 4294967294, %s1116_s26   ;;  %s260_s20 = int_to_ptr.hbm [resolvable:$true] %s259_s20 }
  0x1d   : > { %767 = dma.hbm_to_vmem [thread:$0]  (!%p1208_p5), %s260_s20, 512, %s262_s29, [#allocation9], %s1119_s14, %s1119_s14, %s1120_s15  }
  0x1e   : > { %s40_s8 = sadd.s32 1, %s1112_s25  ;;  %s49_s9 = sadd.s32 1, %s1104_s23 }
  0x1f   : > { %p42_p7 = scmp.ge.s32.totalorder %s40_s8, 2  ;;  %p56_p8 = scmp.ne.s32.totalorder %s1104_s23, %s1100_s22 }
  0x20   : > { %p57_p9 = scmp.eq.s32.totalorder %s1116_s26, 0  ;;  %p62_p10 = scmp.ne.s32.totalorder %s1100_s22, %s1096_s21 }
  0x21   : > { %s1439_s8 = smov (%p42_p7, %s40_s8), 0  ;;  %p151_p13 = scmp.eq.s32.totalorder %s1192_s27, 1 }
  0x22   : > { %1426 = sst [smem:[#allocation20_spill]] %s1439_s8  ;;  %p1235_p11 = por %p57_p9, %p56_p8 }
  0x23   : > { %p1241_p12 = por %p63_p1, %p62_p10  ;;  %s44_s12 = ssub.s32 %s1112_s25, %s1439_s8 }
  0x24   : > { %p47_p0 = scmp.eq.s32.totalorder %s44_s12, 0  ;;  %p157_p2 = scmp.eq.s32.totalorder %s1413_s30, 1 }
  0x25   : > { %p1250_p4 = por %p151_p13, %p56_p8  ;;  %p785_p5 = scmp.lt.s32.totalorder %s1116_s26, 2 }
  0x26   : > { %s1256_s14 = scalar_select %p47_p0, %s1104_s23, %s49_s9  }
  0x27   : > { %p1258_p7 = por %p157_p2, %p62_p10  ;;  %s275_s16 = sand.u32 1, %s1104_s23  }
  0x28   : > { %s708_s17 = sshll.u32 %s275_s16, 3  ;;  %s709_s18 = sshll.u32 %s1112_s25, 3 }
  0x29   : > { %s1431_s0 = sld [smem:[#allocation21_spill]]  ;;  %s279_s29 = scalar_lea.vmem [#allocation2], %s708_s17 }
  0x2a   : > { %s288_s12 = sshll.u32 %s279_s29, 4  ;;  %p769_p8 = pnand %p785_p5, %p1235_p11  ;;  %s289_s12 = int_to_ptr.vmem [resolvable:$true] %s288_s12 }
  0x2b   : > { %s276_s9 = scalar_lea.sflag [#allocation3], %s275_s16  ;;  %s1272_s1 = sand.u32 (!%p1200_p3), 1, %s1100_s22  }
  0x2c   : > { %s711_s19 = sshll.u32 (!%p1200_p3), %s1272_s1, 3 }
  0x2d   : > { %297 = sbr.rel (%p1200_p3) target bundleno = 333 (0x14d), region = 36  ;;  %s303_s17 = scalar_lea.vmem (!%p1200_p3), [#allocation2], %s711_s19 }
  0x2f   : > { %s284_s28 = scalar_lea.hbm %s1431_s0, %s709_s18  ;;  %s300_s18 = scalar_lea.sflag (!%p1200_p3), [#allocation3], %s1272_s1 }
  0x30   : > { %s286_s30 = sshll.u32 %s284_s28, 4  ;;  %s287_s30 = int_to_ptr.hbm [resolvable:$true] %s286_s30 }
  0x31   : > { %771 = dma.hbm_to_vmem [thread:$0]  (!%p769_p8), %s287_s30, 128, %s289_s12, %s276_s9  }
  0x32   : > { %1075 = dma.done.wait (%p1241_p12), %s300_s18, 128  }
  0x33   : > { %1077 = vsyncadd (%p1241_p12), %s300_s18, 4294967168 }
  0x34   : > { %1079 = dma.done.wait (%p63_p1), [#allocation6], 1024  }
  0x35   : > { %1081 = vsyncadd (%p63_p1), [#allocation6], 4294966272 }
  0x36   : > { %1083 = dma.done.wait (%p63_p1), [#allocation9], 512  }
  0x37   : > { %1085 = vsyncadd (%p63_p1), [#allocation9], 4294966784  ;;  %v391_v0 = vld [vmem:[#allocation7 + $0x18] sm:$0xff]  ;;  %v390_v1 = vld [vmem:[#allocation7 + $0x10] sm:$0xff]  ;;  %vm363_vm0 = vcmask 261120   ;;  %s715_s7 = sshll.u32 %s1272_s1, 4 }
  0x38   : > { %v415_v2 = vld [vmem:[#allocation8 + $0x18] sm:$0xff]  ;;  %404 = vmatpush.msra.mxu1 %v391_v0  ;;  %v414_v3 = vld [vmem:[#allocation8 + $0x10] sm:$0xff]  ;;  %v389_v5 = vld [vmem:[#allocation7 + $0x8] sm:$0xff]  ;;  %vm436_vm1 = vcmask 130048   ;;  %s350_s30 = scalar_lea.vmem [#allocation11], %s715_s7  ;;  %s1123_s11 = smov 112  }
  0x39   : > { %428 = vmatpush.msra.mxu2 %v415_v2  ;;  %v362_v4 = vld [vmem:[#allocation5 + $0x18] sm:$0xff]  ;;  %v413_v6 = vld [vmem:[#allocation8 + $0x8] sm:$0xff]  ;;  %v361_v7 = vld [vmem:[#allocation5 + $0x10] sm:$0xff]  ;;  %s1290_s10 = scalar_lea.vmem [#allocation10], %s715_s7  ;;  %s1294_s16 = scalar_lea.vmem [#allocation13], %s715_s7 }
  0x3a   : > { %379 = vmatpush.msra.mxu0 %v362_v4  ;;  %405 = vmatpush.msra.mxu1 %v390_v1  ;;  %v360_v8 = vld [vmem:[#allocation5 + $0x8] sm:$0xff]  ;;  %v388_v9 = vld [vmem:[#allocation7] sm:$0xff]  ;;  %v358_v11 = vld [vmem:[%s303_s17] sm:$0xff]  ;;  %s1299_s20 = sshll.u32 %s1108_s24, 4  ;;  %s500_s9 = sshll.u32 %s350_s30, 4  ;;  %s501_s9 = int_to_ptr.vmem [resolvable:$true] %s500_s9 }
  0x3b   : > { %429 = vmatpush.msra.mxu2 %v414_v3  ;;  %v412_v10 = vld [vmem:[#allocation8] sm:$0xff]  ;;  %s499_s12 = scalar_lea.hbm %s1411_s5, %s1299_s20  ;;  %s463_s19 = sand.u32 1, %s1192_s27  }
  0x3c   : > { %380 = vmatpush.msra.mxu0 %v361_v7  ;;  %406 = vmatpush.msra.mxu1 %v389_v5  ;;  %v359_v12 = vld [vmem:[#allocation5] sm:$0xff]  ;;  %s1306_s18 = sshll.u32 %s499_s12, 4  ;;  %s518_s24 = sshll.u32 %s1294_s16, 4  ;;  %s503_s18 = int_to_ptr.hbm [resolvable:$true] %s1306_s18  ;;  %s519_s24 = int_to_ptr.vmem [resolvable:$true] %s518_s24 }
  0x3d   : > { %430 = vmatpush.msra.mxu2 %v413_v6  ;;  %s481_s0 = scalar_lea.hbm %s1410_s4, %s1299_s20  ;;  %s1321_s27 = scalar_lea.sflag [#allocation12], %s463_s19 }
  0x3e   : > { %381 = vmatpush.msra.mxu0 %v360_v8  ;;  %407 = vmatpush.msra.mxu1 %v388_v9  ;;  %s980_s12 = sshra.s32 %s503_s18, 4  ;;  %s986_s8 = scalar_lea.hbm %s1411_s5, 32  ;;  %s981_s12 = int_to_ptr.hbm [resolvable:$true] %s980_s12 }
  0x3f   : > { %431 = vmatpush.msra.mxu2 %v412_v10  ;;  %719 = vmatmul.msk.f32.vlgmr.msra.gmra.mxu1 %vm363_vm0, %v358_v11  ;;  %s982_s3 = scalar_lea.hbm %s981_s12, 16  ;;  %p987_p10 = scmp.lt.s32.totalorder %s981_s12, %s1411_s5 }
  0x40   : > { %720 = vmatmul.msk.f32.vlgmr.msra.gmra.mxu2 %vm363_vm0, %v358_v11  ;;  %382 = vmatpush.msra.mxu0 %v359_v12  ;;  %p983_p1 = scmp.ne.s32.totalorder %s981_s12, %s982_s3  ;;  %p988_p11 = scmp.lt.s32.totalorder %s986_s8, %s982_s3 }
  0x41   : > { %718 = vmatmul.msk.f32.vlgmr.msra.gmra.mxu0 %vm363_vm0, %v358_v11 }
  0x42   : > { %p984_p3 = pnand %p983_p1, %p1250_p4  ;;  %p989_p12 = por %p988_p11, %p987_p10 }
  0x44   : > { %p985_p9 = pneg %p984_p3 }
  0x46   : > { %p990_p13 = pnand %p989_p12, %p985_p9 }
  0xbc   : > { %v409_v13 = vpop.f32.mrf.mxu1 }
  0xbd   : > { %438 = vst.msk [vmem:[%s350_s30] sm:$0xff] %vm436_vm1, %v409_v13  ;;  %447 = vrot.lane.b32.xlu0 %v409_v13, %s1123_s11 }
  0xbe   : > { %v384_v14 = vpop.f32.mrf.mxu0 }
  0xbf   : > { %v387_v15 = vmul.f32 0.25, %v384_v14 }
  0xc1   : > { %437 = vst.msk [vmem:[%s1290_s10] sm:$0xff] %vm436_vm1, %v387_v15 }
  0xc3   : > { %v433_v16 = vpop.f32.mrf.mxu2 }
  0xc4   : > { %439 = vst.msk [vmem:[%s1294_s16] sm:$0xff] %vm436_vm1, %v433_v16  ;;  %453 = vrot.lane.b32.xlu1 %v433_v16, %s1123_s11 }
  0xc5   : > { %441 = vrot.lane.b32.xlu0 %v387_v15, %s1123_s11  ;;  %s517_s11 = scalar_lea.hbm %s1412_s6, %s1299_s20 }
  0xc6   : > { %s1319_s2 = sshll.u32 %s517_s11, 4  ;;  %s521_s2 = int_to_ptr.hbm [resolvable:$true] %s1319_s2 }
 0x12f   : > { %v448_v17 = vpop.permute.xlu0 %447 }
 0x130   : > { %722 = vst.msk [vmem:[%s350_s30 + $0x8] sm:$0xff] %vm436_vm1, %v448_v17 }
 0x131   : > { %993 = shalt.err (!%p990_p13)
}
 0x132   : > { %s1124_s20 = smov 128   ;;  %s1125_s19 = smov 8  }
 0x133   : > { %753 = dma.vmem_to_hbm [thread:$0]  (%p1250_p4), %s501_s9, 256, %s503_s18, %s1321_s27, %s1124_s20, %s1124_s20, %s1125_s19  }
 0x134   : > { %s482_s11 = sshll.u32 %s1290_s10, 4  ;;  %s1338_s25 = sshll.u32 %s481_s0, 4  ;;  %s1341_s11 = int_to_ptr.vmem [resolvable:$true] %s482_s11  ;;  %s485_s25 = int_to_ptr.hbm [resolvable:$true] %s1338_s25 }
 0x135   : > { %s1008_s3 = sshra.s32 %s521_s2, 4  ;;  %s1014_s18 = scalar_lea.hbm %s1412_s6, 32  ;;  %s1009_s3 = int_to_ptr.hbm [resolvable:$true] %s1008_s3 }
 0x136   : > { %v454_v18 = vpop.permute.xlu1 %453  ;;  %s1010_s8 = scalar_lea.hbm %s1009_s3, 16  ;;  %p1015_p8 = scmp.lt.s32.totalorder %s1009_s3, %s1412_s6 }
 0x137   : > { %723 = vst.msk [vmem:[%s1294_s16 + $0x8] sm:$0xff] %vm436_vm1, %v454_v18  ;;  %v442_v19 = vpop.permute.xlu0 %441  ;;  %p1011_p0 = scmp.ne.s32.totalorder %s1009_s3, %s1010_s8  ;;  %p1016_p1 = scmp.lt.s32.totalorder %s1014_s18, %s1010_s8 }
 0x139   : > { %p1012_p2 = pnand %p1011_p0, %p1250_p4  ;;  %p1017_p3 = por %p1016_p1, %p1015_p8 }
 0x13b   : > { %p1013_p5 = pneg %p1012_p2 }
 0x13d   : > { %p1018_p9 = pnand %p1017_p3, %p1013_p5 }
 0x13f   : > { %1021 = shalt.err (!%p1018_p9)
}
 0x140   : > { %754 = dma.vmem_to_hbm [thread:$0]  (%p1250_p4), %s519_s24, 256, %s521_s2, %s1321_s27, %s1124_s20, %s1124_s20, %s1125_s19  }
 0x141   : > { %721 = vst.msk [vmem:[%s1290_s10 + $0x8] sm:$0xff] %vm436_vm1, %v442_v19  ;;  %s459_s16 = scalar_lea.sflag [#allocation4], %s1272_s1  ;;  %s1036_s12 = sshra.s32 %s485_s25, 4  ;;  %s1037_s12 = int_to_ptr.hbm [resolvable:$true] %s1036_s12 }
 0x142   : > { %s1038_s17 = scalar_lea.hbm %s1037_s12, 16  ;;  %s1042_s3 = scalar_lea.hbm %s1410_s4, 32 }
 0x143   : > { %p1039_p10 = scmp.ne.s32.totalorder %s1037_s12, %s1038_s17  ;;  %p1043_p13 = scmp.lt.s32.totalorder %s1037_s12, %s1410_s4 }
 0x144   : > { %p1044_p0 = scmp.lt.s32.totalorder %s1042_s3, %s1038_s17 }
 0x145   : > { %p1040_p11 = pnand %p1039_p10, %p1250_p4 }
 0x146   : > { %p1045_p2 = por %p1044_p0, %p1043_p13 }
 0x147   : > { %p1041_p12 = pneg %p1040_p11 }
 0x149   : > { %p1046_p5 = pnand %p1045_p2, %p1041_p12 }
 0x14b   : > { %1049 = shalt.err (!%p1046_p5)
}
 0x14c   : > { %752 = dma.vmem_to_hbm [thread:$0]  (%p1250_p4), %s1341_s11, 256, %s485_s25, %s459_s16, %s1124_s20, %s1124_s20, %s1125_s19  }
 0x14d PF: > { %s535_s1 = sand.u32 1, %s1096_s21   ;;  %p773_p8 = pnand %p707_p6, %p1258_p7 }
 0x14e   : > { %s536_s2 = scalar_lea.sflag [#allocation4], %s535_s1 }
 0x14f   : > { %p774_p1 = pneg %p773_p8 }
 0x151   : > { %1087 = dma.done.wait (%p774_p1), %s536_s2, 256  }
 0x152   : > { %1089 = vsyncadd (%p774_p1), %s536_s2, 4294967040  ;;  %s1432_s13 = sadd.s32 4294967294, %s1116_s26  }
 0x153   : > { %s545_s10 = sand.u32 1, %s1432_s13  }
 0x154   : > { %s546_s24 = scalar_lea.sflag [#allocation12], %s545_s10 }
 0x155   : > { %1091 = dma.done.wait (%p774_p1), %s546_s24, 512  }
 0x156   : > { %1093 = vsyncadd (%p774_p1), %s546_s24, 4294966784  ;;  %s28_s26 = sadd.s32 1, %s1116_s26   ;;  %s1433_s24 = sld [smem:[#allocation19_spill]] }
 0x157   : > { %p25_p4 = scmp.ge.s32.totalorder %s28_s26, 4   ;;  %s1434_s25 = sld [smem:[#allocation20_spill]] }
 0x158   : > { %s1435_s21 = smov %s1100_s22  ;;  %s1436_s22 = smov %s1104_s23 }
 0x159   : > { %s1437_s23 = smov %s1256_s14  ;;  %27 = sbr.rel (!%p25_p4) target bundleno = 15 (0xf), region = 128 }
 0x15e   :  { %562 = vsyncpa [#allocation3], 1 }
 0x15f   :  { %564 = vsyncpa [#allocation3 + $0x1], 1 }
 0x160   :  { %565 = vsyncpa [#allocation6], 1 }
 0x161   :  { %566 = vsyncpa [#allocation9], 1 }
 0x162   :  { %567 = vsyncpa [#allocation4], 1 }
 0x163   :  { %569 = vsyncpa [#allocation4 + $0x1], 1 }
 0x164   :  { %570 = vsyncpa [#allocation12], 1 }
 0x165   :  { %572 = vsyncpa [#allocation12 + $0x1], 1 }

</bundles_post_ra>
